<compile_context>
chip_gen: v5e
topology: v5e:2x2
jax: 0.10.0
libtpu: 0.0.40
codegen_flags: <defaults>
</compile_context>

<pallas_src>
import functools

import jax
import jax.numpy as jnp
from jax.experimental import pallas as pl
from jax.experimental.pallas import tpu as pltpu


# ----------------------------------------------------------------------------
# small helpers
# ----------------------------------------------------------------------------
def _round_up(x, m):
    return ((x + m - 1) // m) * m


def _pad_axis(x, axis, new_size):
    pad = new_size - x.shape[axis]
    if pad <= 0:
        return x
    widths = [(0, 0)] * x.ndim
    widths[axis] = (0, pad)
    return jnp.pad(x, widths)


# ----------------------------------------------------------------------------
# Kernel 1: transR KG loss  (PyTorch calc_kg_loss)
# ----------------------------------------------------------------------------
def _kg_loss_kernel(b_true, rd_true, num_rel, tile_b,
                    rl_ref, rel_ref, h_ref, r_ref, t_ref, tp_ref, w_ref,
                    out_ref, acc_ref):
    pid = pl.program_id(0)

    @pl.when(pid == 0)
    def _init():
        acc_ref[0] = 0.0   # sum of -logsigmoid terms
        acc_ref[1] = 0.0   # sum of per-row L2 norms (r, h, t, t')

    h = h_ref[...]                 # [tile_b, Ed_pad] f32
    t = t_ref[...]
    tp = tp_ref[...]
    r = r_ref[...]                 # [tile_b, Rd_pad] f32
    rel = rel_ref[...]             # [tile_b, 1]      int32
    rd_pad = r.shape[1]

    # Stack h/t/t' so each relation's W is pushed to the MXU only once.
    e_all = jnp.concatenate([h, t, tp], axis=0).astype(jnp.bfloat16)  # [3T, Ed]
    rel3 = jnp.concatenate([rel, rel, rel], axis=0)                   # [3T, 1]

    proj = jnp.zeros((3 * tile_b, rd_pad), jnp.float32)
    for rr in range(num_rel):      # num_rel is tiny (static, unrolled)
        w_rr = w_ref[rr].astype(jnp.bfloat16)                         # [Ed, Rd]
        p = jnp.dot(e_all, w_rr, preferred_element_type=jnp.float32)  # MXU
        proj = jnp.where(rel3 == rr, p, proj)

    h_r = proj[:tile_b]
    t_r = proj[tile_b:2 * tile_b]
    tp_r = proj[2 * tile_b:]

    # transR scores (elementwise, f32)
    g = jnp.square(h_r + r - t_r)
    gp = jnp.square(h_r + r - tp_r)
    x = gp - g
    # stable logsigmoid: min(x, 0) - log1p(exp(-|x|))
    logsig = jnp.minimum(x, 0.0) - jnp.log1p(jnp.exp(-jnp.abs(x)))

    # mask padded batch rows (last tile) and padded relation-dim columns
    row_ids = pid * tile_b + jax.lax.broadcasted_iota(
        jnp.int32, (tile_b, rd_pad), 0)
    col_ids = jax.lax.broadcasted_iota(jnp.int32, (tile_b, rd_pad), 1)
    row_ok_full = row_ids < b_true                    # [tile_b, rd_pad]
    elem_ok = jnp.logical_and(row_ok_full, col_ids < rd_true)
    row_ok = row_ok_full[:, :1]                       # [tile_b, 1]

    loss_part = jnp.sum(jnp.where(elem_ok, -logsig, 0.0))

    def row_norm_sum(e):
        n = jnp.sqrt(jnp.sum(e * e, axis=1, keepdims=True))   # [tile_b, 1]
        return jnp.sum(jnp.where(row_ok, n, 0.0))

    reg_part = (row_norm_sum(r) + row_norm_sum(h)
                + row_norm_sum(t) + row_norm_sum(tp))

    acc_ref[0] = acc_ref[0] + loss_part
    acc_ref[1] = acc_ref[1] + reg_part

    @pl.when(pid == pl.num_programs(0) - 1)
    def _finalize():
        loss = acc_ref[0] / float(b_true * rd_true)
        reg = acc_ref[1] / float(b_true)
        out_ref[0, 0] = loss + rl_ref[0] * reg


def kg_loss(rel_ids, h_emb, r_emb, t_emb, tp_emb, W, reg_lambda, *,
            rd_true, tile_b=512):
    """transR KG loss.  W is the shared [R, Ed_pad, Rd_pad] tensor (NOT gathered
    per row); relation ids select the projection inside the kernel."""
    B = h_emb.shape[0]
    num_rel, ed_pad, rd_pad = W.shape

    tile_b = min(tile_b, _round_up(B, 8))
    b_pad = _round_up(B, tile_b)

    def pad_b(a):
        return _pad_axis(a, 0, b_pad)

    rel_ids = pad_b(rel_ids.astype(jnp.int32).reshape(-1, 1))
    h_emb = pad_b(h_emb)
    r_emb = pad_b(r_emb)
    t_emb = pad_b(t_emb)
    tp_emb = pad_b(tp_emb)
    rl = jnp.asarray([reg_lambda], jnp.float32)

    grid = (b_pad // tile_b,)
    kernel = functools.partial(_kg_loss_kernel, B, rd_true, num_rel, tile_b)

    cost = pl.CostEstimate(
        flops=int(2 * 3 * b_pad * ed_pad * rd_pad * num_rel),
        transcendentals=int(2 * B * rd_true + 4 * B),
        bytes_accessed=int(4 * (b_pad * (3 * ed_pad + rd_pad + 1)
                                + num_rel * ed_pad * rd_pad) + 4))

    out = pl.pallas_call(
        kernel,
        out_shape=jax.ShapeDtypeStruct((1, 1), jnp.float32),
        grid=grid,
        in_specs=[
            pl.BlockSpec(memory_space=pltpu.MemorySpace.SMEM),            # reg_lambda
            pl.BlockSpec((tile_b, 1), lambda i: (i, 0)),                  # relation ids
            pl.BlockSpec((tile_b, ed_pad), lambda i: (i, 0)),             # h_emb
            pl.BlockSpec((tile_b, rd_pad), lambda i: (i, 0)),             # r_emb
            pl.BlockSpec((tile_b, ed_pad), lambda i: (i, 0)),             # t_emb
            pl.BlockSpec((tile_b, ed_pad), lambda i: (i, 0)),             # t'_emb
            pl.BlockSpec((num_rel, ed_pad, rd_pad), lambda i: (0, 0, 0)), # shared W
        ],
        out_specs=pl.BlockSpec(memory_space=pltpu.MemorySpace.SMEM),
        scratch_shapes=[pltpu.SMEM((2,), jnp.float32)],
        compiler_params=pltpu.CompilerParams(
            dimension_semantics=("arbitrary",),
            vmem_limit_bytes=32 * 1024 * 1024),
        cost_estimate=cost,
    )(rl, rel_ids, h_emb, r_emb, t_emb, tp_emb, W)
    return out[0, 0]


# ----------------------------------------------------------------------------
# Kernel 2: attention coefficients  (PyTorch calc_attn, single relation r)
# ----------------------------------------------------------------------------
def _attn_kernel(tile_b, h_ref, t_ref, r_ref, w_ref, out_ref):
    # Fuse the two matmuls: W is pushed to the MXU once for [h; t].
    ht = jnp.concatenate([h_ref[...], t_ref[...]], axis=0).astype(jnp.bfloat16)
    w = w_ref[...].astype(jnp.bfloat16)
    proj = jnp.dot(ht, w, preferred_element_type=jnp.float32)   # [2T, Rd_pad]
    hW = proj[:tile_b]
    tW = proj[tile_b:]
    out_ref[...] = tW * jnp.tanh(hW + r_ref[...])               # f32 elementwise


def attn_coeff(h_emb, t_emb, r_emb, W_r, *, rd_true, tile_b=512):
    B = h_emb.shape[0]
    ed_pad, rd_pad = W_r.shape

    tile_b = min(tile_b, _round_up(B, 8))
    b_pad = _round_up(B, tile_b)
    h_emb = _pad_axis(h_emb, 0, b_pad)
    t_emb = _pad_axis(t_emb, 0, b_pad)
    r2 = r_emb.reshape(1, rd_pad)

    grid = (b_pad // tile_b,)
    kernel = functools.partial(_attn_kernel, tile_b)

    cost = pl.CostEstimate(
        flops=int(2 * 2 * b_pad * ed_pad * rd_pad),
        transcendentals=int(b_pad * rd_pad),
        bytes_accessed=int(4 * (2 * b_pad * ed_pad + rd_pad
                                + ed_pad * rd_pad + b_pad * rd_pad)))

    out = pl.pallas_call(
        kernel,
        out_shape=jax.ShapeDtypeStruct((b_pad, rd_pad), jnp.float32),
        grid=grid,
        in_specs=[
            pl.BlockSpec((tile_b, ed_pad), lambda i: (i, 0)),   # h_emb
            pl.BlockSpec((tile_b, ed_pad), lambda i: (i, 0)),   # t_emb
            pl.BlockSpec((1, rd_pad), lambda i: (0, 0)),        # r_emb
            pl.BlockSpec((ed_pad, rd_pad), lambda i: (0, 0)),   # W_r
        ],
        out_specs=pl.BlockSpec((tile_b, rd_pad), lambda i: (i, 0)),
        compiler_params=pltpu.CompilerParams(
            dimension_semantics=("parallel",),      # 2 TCs on v7x
            vmem_limit_bytes=32 * 1024 * 1024),
        cost_estimate=cost,
    )(h_emb, t_emb, r2, W_r)
    return out[:B, :rd_true]


# ----------------------------------------------------------------------------
# Parameters (deterministic xavier-uniform init, 128-lane padded storage)
# ----------------------------------------------------------------------------
def xavier_uniform(key, shape):
    fan_in, fan_out = shape[-2], shape[-1]
    bound = jnp.sqrt(6.0 / (fan_in + fan_out))
    return jax.random.uniform(key, shape, jnp.float32, -bound, bound)


class ShadeWatcherGNNPallas:
    def __init__(self, num_entities, num_relations, entity_dim, relation_dim,
                 reg_lambda, key):
        k1, k2, k3 = jax.random.split(key, 3)
        self.entity_dim = entity_dim
        self.relation_dim = relation_dim
        self.reg_lambda = reg_lambda

        ed_pad = _round_up(entity_dim, 128)
        rd_pad = _round_up(relation_dim, 128)

        ent = xavier_uniform(k1, (num_entities, entity_dim))
        rel = xavier_uniform(k2, (num_relations, relation_dim))
        w = xavier_uniform(k3, (num_relations, entity_dim, relation_dim))

        # stored lane-padded with zeros (zero pad never changes projections,
        # norms, or attention on the true dims)
        self.entity_embeddings = _pad_axis(ent, 1, ed_pad)
        self.relation_embeddings = _pad_axis(rel, 1, rd_pad)
        self.transformation_M = _pad_axis(_pad_axis(w, 1, ed_pad), 2, rd_pad)
        # TODO(synk): original __init__ references self.linear_transform.weight
        # which is never defined in the PyTorch module; nothing to port.

    def calc_kg_loss(self, h, r, t, t_prime):
        r_emb = self.relation_embeddings[r]          # [B, Rd_pad]
        h_emb = self.entity_embeddings[h]            # [B, Ed_pad]
        t_emb = self.entity_embeddings[t]            # [B, Ed_pad]
        tp_emb = self.entity_embeddings[t_prime]     # [B, Ed_pad]
        return kg_loss(r, h_emb, r_emb, t_emb, tp_emb, self.transformation_M,
                       self.reg_lambda, rd_true=self.relation_dim)

    def calc_attn(self, h, t, r_scalar):
        r_emb = self.relation_embeddings[r_scalar]   # [Rd_pad]
        h_emb = self.entity_embeddings[h]            # [B, Ed_pad]
        t_emb = self.entity_embeddings[t]            # [B, Ed_pad]
        W_r = self.transformation_M[r_scalar]        # [Ed_pad, Rd_pad]
        return attn_coeff(h_emb, t_emb, r_emb, W_r, rd_true=self.relation_dim)

    def forward(self, *inputs, mode):
        # The PyTorch forward bodies are `pass`; we map the two modes to the
        # two compute paths.  TODO(synk): no further semantics in the original.
        if mode == "transR":
            return self.calc_kg_loss(*inputs)
        if mode == "cf":
            return self.calc_attn(*inputs)
        raise ValueError(f"unknown mode {mode!r}")


# ----------------------------------------------------------------------------
# Pure-JAX references (matching the kernels' bf16-matmul / f32-elementwise math)
# ----------------------------------------------------------------------------
def ref_kg_loss(h_emb, r_emb, t_emb, tp_emb, W_r, reg_lambda):
    def proj(e):
        return jnp.einsum("bd,bdr->br", e.astype(jnp.bfloat16),
                          W_r.astype(jnp.bfloat16),
                          preferred_element_type=jnp.float32)
    h_r, t_r, tp_r = proj(h_emb), proj(t_emb), proj(tp_emb)
    g = jnp.square(h_r + r_emb - t_r)
    gp = jnp.square(h_r + r_emb - tp_r)
    loss = jnp.mean(-jax.nn.log_sigmoid(gp - g))
    mn = lambda e: jnp.mean(jnp.linalg.norm(e, axis=1))
    return loss + reg_lambda * (mn(r_emb) + mn(h_emb) + mn(t_emb) + mn(tp_emb))


def ref_attn(h_emb, t_emb, r_emb, W_r):
    wb = W_r.astype(jnp.bfloat16)
    hW = jnp.dot(h_emb.astype(jnp.bfloat16), wb,
                 preferred_element_type=jnp.float32)
    tW = jnp.dot(t_emb.astype(jnp.bfloat16), wb,
                 preferred_element_type=jnp.float32)
    return tW * jnp.tanh(hW + r_emb)


# ----------------------------------------------------------------------------
if __name__ == "__main__":
    key = jax.random.PRNGKey(0)
    k_model, k_h, k_r, k_t, k_tp = jax.random.split(key, 5)

    num_entities, num_relations = 64, 4
    entity_dim, relation_dim = 32, 32
    batch = 8
    reg_lambda = 1e-5

    model = ShadeWatcherGNNPallas(num_entities, num_relations,
                                  entity_dim, relation_dim, reg_lambda, k_model)

    h = jax.random.randint(k_h, (batch,), 0, num_entities)
    r = jax.random.randint(k_r, (batch,), 0, num_relations)
    t = jax.random.randint(k_t, (batch,), 0, num_entities)
    t_prime = jax.random.randint(k_tp, (batch,), 0, num_entities)

    # transR path
    loss = jax.block_until_ready(model.calc_kg_loss(h, r, t, t_prime))
    # attention path (single relation, as in update_adj_mat_with_attn_coeff)
    attn = jax.block_until_ready(model.calc_attn(h, t, 1))

    # references on the true (unpadded) parameters
    ent_true = model.entity_embeddings[:, :entity_dim]
    rel_true = model.relation_embeddings[:, :relation_dim]
    W_true = model.transformation_M[:, :entity_dim, :relation_dim]

    loss_ref = ref_kg_loss(ent_true[h], rel_true[r], ent_true[t],
                           ent_true[t_prime], W_true[r], reg_lambda)
    attn_ref = ref_attn(ent_true[h], ent_true[t], rel_true[1], W_true[1])

    assert jnp.allclose(loss, loss_ref, rtol=1e-3, atol=1e-3), (loss, loss_ref)
    assert attn.shape == (batch, relation_dim)
    assert jnp.allclose(attn, attn_ref, rtol=1e-3, atol=1e-3)

    print("KERNEL_OK")
</pallas_src>

<mosaic_0001>
module attributes {stable_mosaic.version = 11 : i64} {
  func.func @_kg_loss_kernel(%arg0: i32, %arg1: memref<1xf32, #tpu.memory_space<smem>>, %arg2: memref<8x1xi32, #tpu.memory_space<vmem>>, %arg3: memref<8x128xf32, #tpu.memory_space<vmem>>, %arg4: memref<8x128xf32, #tpu.memory_space<vmem>>, %arg5: memref<8x128xf32, #tpu.memory_space<vmem>>, %arg6: memref<8x128xf32, #tpu.memory_space<vmem>>, %arg7: memref<4x128x128xf32, #tpu.memory_space<vmem>>, %arg8: memref<1x1xf32, #tpu.memory_space<smem>>, %arg9: memref<2xf32, #tpu.memory_space<smem>>) attributes {dimension_semantics = [#tpu.dimension_semantics<arbitrary>], iteration_bounds = array<i64: 1>, scalar_prefetch = 0 : i64, scratch_operands = 1 : i64, tpu.core_type = #tpu.core_type<tc>, window_params = [{transform_indices = @transform_0, window_bounds = array<i64: 1>}, {transform_indices = @transform_1, window_bounds = array<i64: 8, 1>}, {transform_indices = @transform_2, window_bounds = array<i64: 8, 128>}, {transform_indices = @transform_3, window_bounds = array<i64: 8, 128>}, {transform_indices = @transform_4, window_bounds = array<i64: 8, 128>}, {transform_indices = @transform_5, window_bounds = array<i64: 8, 128>}, {pipeline_mode = #tpu.pipeline_mode<synchronous>, transform_indices = @transform_6, window_bounds = array<i64: 4, 128, 128>}, {transform_indices = @transform_7, window_bounds = array<i64: 1, 1>}]} {
    %c0_i32 = arith.constant 0 : i32
    %0 = arith.cmpi eq, %arg0, %c0_i32 : i32
    %1 = arith.extui %0 : i1 to i32
    %c0_i32_0 = arith.constant 0 : i32
    %2 = arith.cmpi ne, %1, %c0_i32_0 : i32
    scf.if %2 {
      %cst_48 = arith.constant 0.000000e+00 : f32
      %c0_49 = arith.constant 0 : index
      %137 = memref.load %arg9[%c0_49] : memref<2xf32, #tpu.memory_space<smem>>
      memref.store %cst_48, %arg9[%c0_49] : memref<2xf32, #tpu.memory_space<smem>>
      %cst_50 = arith.constant 0.000000e+00 : f32
      %c1_51 = arith.constant 1 : index
      %138 = memref.load %arg9[%c1_51] : memref<2xf32, #tpu.memory_space<smem>>
      memref.store %cst_50, %arg9[%c1_51] : memref<2xf32, #tpu.memory_space<smem>>
    } else {
    }
    %c0 = arith.constant 0 : index
    %c0_1 = arith.constant 0 : index
    %3 = vector.load %arg3[%c0, %c0_1] : memref<8x128xf32, #tpu.memory_space<vmem>>, vector<8x128xf32>
    %c0_2 = arith.constant 0 : index
    %c0_3 = arith.constant 0 : index
    %4 = vector.load %arg5[%c0_2, %c0_3] : memref<8x128xf32, #tpu.memory_space<vmem>>, vector<8x128xf32>
    %c0_4 = arith.constant 0 : index
    %c0_5 = arith.constant 0 : index
    %5 = vector.load %arg6[%c0_4, %c0_5] : memref<8x128xf32, #tpu.memory_space<vmem>>, vector<8x128xf32>
    %c0_6 = arith.constant 0 : index
    %c0_7 = arith.constant 0 : index
    %6 = vector.load %arg4[%c0_6, %c0_7] : memref<8x128xf32, #tpu.memory_space<vmem>>, vector<8x128xf32>
    %c0_8 = arith.constant 0 : index
    %c0_9 = arith.constant 0 : index
    %7 = vector.load %arg2[%c0_8, %c0_9] : memref<8x1xi32, #tpu.memory_space<vmem>>, vector<8x1xi32>
    %8 = tpu.concatenate %3, %4, %5 in 0 : vector<8x128xf32>, vector<8x128xf32>, vector<8x128xf32> -> vector<24x128xf32>
    %9 = arith.truncf %8 : vector<24x128xf32> to vector<24x128xbf16>
    %10 = tpu.concatenate %7, %7, %7 in 0 : vector<8x1xi32>, vector<8x1xi32>, vector<8x1xi32> -> vector<24x1xi32>
    %cst = arith.constant 0.000000e+00 : f32
    %11 = vector.broadcast %cst : f32 to vector<24x128xf32>
    %c0_10 = arith.constant 0 : index
    %c0_11 = arith.constant 0 : index
    %c0_12 = arith.constant 0 : index
    %12 = vector.load %arg7[%c0_10, %c0_11, %c0_12] : memref<4x128x128xf32, #tpu.memory_space<vmem>>, vector<1x128x128xf32>
    %13 = vector.shape_cast %12 : vector<1x128x128xf32> to vector<128x128xf32>
    %14 = arith.truncf %13 : vector<128x128xf32> to vector<128x128xbf16>
    %cst_13 = arith.constant dense<0.000000e+00> : vector<24x128xf32>
    %15 = tpu.matmul %9, %14, %cst_13 {dimension_numbers = #tpu.dot_dimension_numbers<[1], [0], [0], [1], [0, 0, 1, 1], [], []>} : vector<24x128xbf16>, vector<128x128xbf16>, vector<24x128xf32> -> vector<24x128xf32>
    %c0_i32_14 = arith.constant 0 : i32
    %16 = vector.broadcast %c0_i32_14 : i32 to vector<24x1xi32>
    %17 = arith.cmpi eq, %10, %16 : vector<24x1xi32>
    %18 = vector.shape_cast %17 : vector<24x1xi1> to vector<24x1xi1>
    %19 = vector.broadcast %18 : vector<24x1xi1> to vector<24x128xi1>
    %20 = arith.select %19, %15, %11 : vector<24x128xi1>, vector<24x128xf32>
    %c1 = arith.constant 1 : index
    %c0_15 = arith.constant 0 : index
    %c0_16 = arith.constant 0 : index
    %21 = vector.load %arg7[%c1, %c0_15, %c0_16] : memref<4x128x128xf32, #tpu.memory_space<vmem>>, vector<1x128x128xf32>
    %22 = vector.shape_cast %21 : vector<1x128x128xf32> to vector<128x128xf32>
    %23 = arith.truncf %22 : vector<128x128xf32> to vector<128x128xbf16>
    %cst_17 = arith.constant dense<0.000000e+00> : vector<24x128xf32>
    %24 = tpu.matmul %9, %23, %cst_17 {dimension_numbers = #tpu.dot_dimension_numbers<[1], [0], [0], [1], [0, 0, 1, 1], [], []>} : vector<24x128xbf16>, vector<128x128xbf16>, vector<24x128xf32> -> vector<24x128xf32>
    %c1_i32 = arith.constant 1 : i32
    %25 = vector.broadcast %c1_i32 : i32 to vector<24x1xi32>
    %26 = arith.cmpi eq, %10, %25 : vector<24x1xi32>
    %27 = vector.shape_cast %26 : vector<24x1xi1> to vector<24x1xi1>
    %28 = vector.broadcast %27 : vector<24x1xi1> to vector<24x128xi1>
    %29 = arith.select %28, %24, %20 : vector<24x128xi1>, vector<24x128xf32>
    %c2 = arith.constant 2 : index
    %c0_18 = arith.constant 0 : index
    %c0_19 = arith.constant 0 : index
    %30 = vector.load %arg7[%c2, %c0_18, %c0_19] : memref<4x128x128xf32, #tpu.memory_space<vmem>>, vector<1x128x128xf32>
    %31 = vector.shape_cast %30 : vector<1x128x128xf32> to vector<128x128xf32>
    %32 = arith.truncf %31 : vector<128x128xf32> to vector<128x128xbf16>
    %cst_20 = arith.constant dense<0.000000e+00> : vector<24x128xf32>
    %33 = tpu.matmul %9, %32, %cst_20 {dimension_numbers = #tpu.dot_dimension_numbers<[1], [0], [0], [1], [0, 0, 1, 1], [], []>} : vector<24x128xbf16>, vector<128x128xbf16>, vector<24x128xf32> -> vector<24x128xf32>
    %c2_i32 = arith.constant 2 : i32
    %34 = vector.broadcast %c2_i32 : i32 to vector<24x1xi32>
    %35 = arith.cmpi eq, %10, %34 : vector<24x1xi32>
    %36 = vector.shape_cast %35 : vector<24x1xi1> to vector<24x1xi1>
    %37 = vector.broadcast %36 : vector<24x1xi1> to vector<24x128xi1>
    %38 = arith.select %37, %33, %29 : vector<24x128xi1>, vector<24x128xf32>
    %c3 = arith.constant 3 : index
    %c0_21 = arith.constant 0 : index
    %c0_22 = arith.constant 0 : index
    %39 = vector.load %arg7[%c3, %c0_21, %c0_22] : memref<4x128x128xf32, #tpu.memory_space<vmem>>, vector<1x128x128xf32>
    %40 = vector.shape_cast %39 : vector<1x128x128xf32> to vector<128x128xf32>
    %41 = arith.truncf %40 : vector<128x128xf32> to vector<128x128xbf16>
    %cst_23 = arith.constant dense<0.000000e+00> : vector<24x128xf32>
    %42 = tpu.matmul %9, %41, %cst_23 {dimension_numbers = #tpu.dot_dimension_numbers<[1], [0], [0], [1], [0, 0, 1, 1], [], []>} : vector<24x128xbf16>, vector<128x128xbf16>, vector<24x128xf32> -> vector<24x128xf32>
    %c3_i32 = arith.constant 3 : i32
    %43 = vector.broadcast %c3_i32 : i32 to vector<24x1xi32>
    %44 = arith.cmpi eq, %10, %43 : vector<24x1xi32>
    %45 = vector.shape_cast %44 : vector<24x1xi1> to vector<24x1xi1>
    %46 = vector.broadcast %45 : vector<24x1xi1> to vector<24x128xi1>
    %47 = arith.select %46, %42, %38 : vector<24x128xi1>, vector<24x128xf32>
    %48 = vector.extract_strided_slice %47 {offsets = [0, 0], sizes = [8, 128], strides = [1, 1]} : vector<24x128xf32> to vector<8x128xf32>
    %49 = vector.extract_strided_slice %47 {offsets = [8, 0], sizes = [8, 128], strides = [1, 1]} : vector<24x128xf32> to vector<8x128xf32>
    %50 = vector.extract_strided_slice %47 {offsets = [16, 0], sizes = [8, 128], strides = [1, 1]} : vector<24x128xf32> to vector<8x128xf32>
    %51 = arith.addf %48, %6 : vector<8x128xf32>
    %52 = arith.subf %51, %49 : vector<8x128xf32>
    %53 = arith.mulf %52, %52 : vector<8x128xf32>
    %54 = arith.addf %48, %6 : vector<8x128xf32>
    %55 = arith.subf %54, %50 : vector<8x128xf32>
    %56 = arith.mulf %55, %55 : vector<8x128xf32>
    %57 = arith.subf %56, %53 : vector<8x128xf32>
    %cst_24 = arith.constant 0.000000e+00 : f32
    %58 = vector.broadcast %cst_24 : f32 to vector<8x128xf32>
    %59 = arith.minimumf %57, %58 : vector<8x128xf32>
    %60 = math.absf %57 : vector<8x128xf32>
    %cst_25 = arith.constant 0.000000e+00 : f32
    %61 = vector.broadcast %cst_25 : f32 to vector<8x128xf32>
    %62 = arith.subf %61, %60 : vector<8x128xf32>
    %63 = math.exp %62 : vector<8x128xf32>
    %64 = math.log1p %63 : vector<8x128xf32>
    %65 = arith.subf %59, %64 : vector<8x128xf32>
    %c8_i32 = arith.constant 8 : i32
    %66 = arith.muli %arg0, %c8_i32 : i32
    %67 = tpu.iota {dimensions = array<i32: 0>} : vector<8x128xi32>
    %68 = vector.broadcast %66 : i32 to vector<8x128xi32>
    %69 = arith.addi %68, %67 : vector<8x128xi32>
    %70 = tpu.iota {dimensions = array<i32: 1>} : vector<8x128xi32>
    %c8_i32_26 = arith.constant 8 : i32
    %71 = vector.broadcast %c8_i32_26 : i32 to vector<8x128xi32>
    %72 = arith.cmpi slt, %69, %71 : vector<8x128xi32>
    %c32_i32 = arith.constant 32 : i32
    %73 = vector.broadcast %c32_i32 : i32 to vector<8x128xi32>
    %74 = arith.cmpi slt, %70, %73 : vector<8x128xi32>
    %75 = arith.andi %72, %74 : vector<8x128xi1>
    %76 = vector.extract_strided_slice %72 {offsets = [0, 0], sizes = [8, 1], strides = [1, 1]} : vector<8x128xi1> to vector<8x1xi1>
    %cst_27 = arith.constant 0.000000e+00 : f32
    %77 = vector.broadcast %cst_27 : f32 to vector<8x128xf32>
    %78 = arith.subf %77, %65 : vector<8x128xf32>
    %cst_28 = arith.constant 0.000000e+00 : f32
    %79 = vector.broadcast %cst_28 : f32 to vector<8x128xf32>
    %80 = arith.select %75, %78, %79 : vector<8x128xi1>, vector<8x128xf32>
    %81 = vector.shape_cast %80 : vector<8x128xf32> to vector<1x8x128xf32>
    %cst_29 = arith.constant dense<0.000000e+00> : vector<1xf32>
    %82 = vector.multi_reduction <add>, %81, %cst_29 [1, 2] : vector<1x8x128xf32> to vector<1xf32>
    %83 = vector.shape_cast %82 : vector<1xf32> to vector<1x1x1xf32>
    %84 = vector.extract %83[0, 0, 0] : f32 from vector<1x1x1xf32>
    %85 = arith.mulf %6, %6 : vector<8x128xf32>
    %cst_30 = arith.constant dense<0.000000e+00> : vector<8xf32>
    %86 = vector.multi_reduction <add>, %85, %cst_30 [1] : vector<8x128xf32> to vector<8xf32>
    %87 = vector.shape_cast %86 : vector<8xf32> to vector<8x1xf32>
    %88 = math.sqrt %87 : vector<8x1xf32>
    %cst_31 = arith.constant 0.000000e+00 : f32
    %89 = vector.broadcast %cst_31 : f32 to vector<8x1xf32>
    %90 = arith.select %76, %88, %89 : vector<8x1xi1>, vector<8x1xf32>
    %91 = vector.shape_cast %90 : vector<8x1xf32> to vector<1x8x1xf32>
    %cst_32 = arith.constant dense<0.000000e+00> : vector<1xf32>
    %92 = vector.multi_reduction <add>, %91, %cst_32 [1, 2] : vector<1x8x1xf32> to vector<1xf32>
    %93 = vector.shape_cast %92 : vector<1xf32> to vector<1x1x1xf32>
    %94 = vector.extract %93[0, 0, 0] : f32 from vector<1x1x1xf32>
    %95 = arith.mulf %3, %3 : vector<8x128xf32>
    %cst_33 = arith.constant dense<0.000000e+00> : vector<8xf32>
    %96 = vector.multi_reduction <add>, %95, %cst_33 [1] : vector<8x128xf32> to vector<8xf32>
    %97 = vector.shape_cast %96 : vector<8xf32> to vector<8x1xf32>
    %98 = math.sqrt %97 : vector<8x1xf32>
    %cst_34 = arith.constant 0.000000e+00 : f32
    %99 = vector.broadcast %cst_34 : f32 to vector<8x1xf32>
    %100 = arith.select %76, %98, %99 : vector<8x1xi1>, vector<8x1xf32>
    %101 = vector.shape_cast %100 : vector<8x1xf32> to vector<1x8x1xf32>
    %cst_35 = arith.constant dense<0.000000e+00> : vector<1xf32>
    %102 = vector.multi_reduction <add>, %101, %cst_35 [1, 2] : vector<1x8x1xf32> to vector<1xf32>
    %103 = vector.shape_cast %102 : vector<1xf32> to vector<1x1x1xf32>
    %104 = vector.extract %103[0, 0, 0] : f32 from vector<1x1x1xf32>
    %105 = arith.addf %94, %104 : f32
    %106 = arith.mulf %4, %4 : vector<8x128xf32>
    %cst_36 = arith.constant dense<0.000000e+00> : vector<8xf32>
    %107 = vector.multi_reduction <add>, %106, %cst_36 [1] : vector<8x128xf32> to vector<8xf32>
    %108 = vector.shape_cast %107 : vector<8xf32> to vector<8x1xf32>
    %109 = math.sqrt %108 : vector<8x1xf32>
    %cst_37 = arith.constant 0.000000e+00 : f32
    %110 = vector.broadcast %cst_37 : f32 to vector<8x1xf32>
    %111 = arith.select %76, %109, %110 : vector<8x1xi1>, vector<8x1xf32>
    %112 = vector.shape_cast %111 : vector<8x1xf32> to vector<1x8x1xf32>
    %cst_38 = arith.constant dense<0.000000e+00> : vector<1xf32>
    %113 = vector.multi_reduction <add>, %112, %cst_38 [1, 2] : vector<1x8x1xf32> to vector<1xf32>
    %114 = vector.shape_cast %113 : vector<1xf32> to vector<1x1x1xf32>
    %115 = vector.extract %114[0, 0, 0] : f32 from vector<1x1x1xf32>
    %116 = arith.addf %105, %115 : f32
    %117 = arith.mulf %5, %5 : vector<8x128xf32>
    %cst_39 = arith.constant dense<0.000000e+00> : vector<8xf32>
    %118 = vector.multi_reduction <add>, %117, %cst_39 [1] : vector<8x128xf32> to vector<8xf32>
    %119 = vector.shape_cast %118 : vector<8xf32> to vector<8x1xf32>
    %120 = math.sqrt %119 : vector<8x1xf32>
    %cst_40 = arith.constant 0.000000e+00 : f32
    %121 = vector.broadcast %cst_40 : f32 to vector<8x1xf32>
    %122 = arith.select %76, %120, %121 : vector<8x1xi1>, vector<8x1xf32>
    %123 = vector.shape_cast %122 : vector<8x1xf32> to vector<1x8x1xf32>
    %cst_41 = arith.constant dense<0.000000e+00> : vector<1xf32>
    %124 = vector.multi_reduction <add>, %123, %cst_41 [1, 2] : vector<1x8x1xf32> to vector<1xf32>
    %125 = vector.shape_cast %124 : vector<1xf32> to vector<1x1x1xf32>
    %126 = vector.extract %125[0, 0, 0] : f32 from vector<1x1x1xf32>
    %127 = arith.addf %116, %126 : f32
    %c0_42 = arith.constant 0 : index
    %128 = memref.load %arg9[%c0_42] : memref<2xf32, #tpu.memory_space<smem>>
    %129 = arith.addf %128, %84 : f32
    %c0_43 = arith.constant 0 : index
    %130 = memref.load %arg9[%c0_43] : memref<2xf32, #tpu.memory_space<smem>>
    memref.store %129, %arg9[%c0_43] : memref<2xf32, #tpu.memory_space<smem>>
    %c1_44 = arith.constant 1 : index
    %131 = memref.load %arg9[%c1_44] : memref<2xf32, #tpu.memory_space<smem>>
    %132 = arith.addf %131, %127 : f32
    %c1_45 = arith.constant 1 : index
    %133 = memref.load %arg9[%c1_45] : memref<2xf32, #tpu.memory_space<smem>>
    memref.store %132, %arg9[%c1_45] : memref<2xf32, #tpu.memory_space<smem>>
    %c0_i32_46 = arith.constant 0 : i32
    %134 = arith.cmpi eq, %arg0, %c0_i32_46 : i32
    %135 = arith.extui %134 : i1 to i32
    %c0_i32_47 = arith.constant 0 : i32
    %136 = arith.cmpi ne, %135, %c0_i32_47 : i32
    scf.if %136 {
      %c0_48 = arith.constant 0 : index
      %137 = memref.load %arg9[%c0_48] : memref<2xf32, #tpu.memory_space<smem>>
      %cst_49 = arith.constant 2.560000e+02 : f32
      %138 = arith.divf %137, %cst_49 : f32
      %c1_50 = arith.constant 1 : index
      %139 = memref.load %arg9[%c1_50] : memref<2xf32, #tpu.memory_space<smem>>
      %cst_51 = arith.constant 8.000000e+00 : f32
      %140 = arith.divf %139, %cst_51 : f32
      %c0_52 = arith.constant 0 : index
      %141 = memref.load %arg1[%c0_52] : memref<1xf32, #tpu.memory_space<smem>>
      %142 = arith.mulf %141, %140 : f32
      %143 = arith.addf %138, %142 : f32
      %c0_53 = arith.constant 0 : index
      %c0_54 = arith.constant 0 : index
      %144 = memref.load %arg8[%c0_53, %c0_54] : memref<1x1xf32, #tpu.memory_space<smem>>
      memref.store %143, %arg8[%c0_53, %c0_54] : memref<1x1xf32, #tpu.memory_space<smem>>
    } else {
    }
    return
  }
  func.func @transform_0(%arg0: i32) -> i32 {
    %c0_i32 = arith.constant 0 : i32
    %c0_i32_0 = arith.constant 0 : i32
    return %c0_i32 : i32
  }
  func.func @transform_1(%arg0: i32) -> (i32, i32) {
    %c0_i32 = arith.constant 0 : i32
    %c0_i32_0 = arith.constant 0 : i32
    return %arg0, %c0_i32 : i32, i32
  }
  func.func @transform_2(%arg0: i32) -> (i32, i32) {
    %c0_i32 = arith.constant 0 : i32
    %c0_i32_0 = arith.constant 0 : i32
    return %arg0, %c0_i32 : i32, i32
  }
  func.func @transform_3(%arg0: i32) -> (i32, i32) {
    %c0_i32 = arith.constant 0 : i32
    %c0_i32_0 = arith.constant 0 : i32
    return %arg0, %c0_i32 : i32, i32
  }
  func.func @transform_4(%arg0: i32) -> (i32, i32) {
    %c0_i32 = arith.constant 0 : i32
    %c0_i32_0 = arith.constant 0 : i32
    return %arg0, %c0_i32 : i32, i32
  }
  func.func @transform_5(%arg0: i32) -> (i32, i32) {
    %c0_i32 = arith.constant 0 : i32
    %c0_i32_0 = arith.constant 0 : i32
    return %arg0, %c0_i32 : i32, i32
  }
  func.func @transform_6(%arg0: i32) -> (i32, i32, i32) {
    %c0_i32 = arith.constant 0 : i32
    %c0_i32_0 = arith.constant 0 : i32
    %c0_i32_1 = arith.constant 0 : i32
    %c0_i32_2 = arith.constant 0 : i32
    return %c0_i32, %c0_i32_0, %c0_i32_1 : i32, i32, i32
  }
  func.func @transform_7(%arg0: i32) -> (i32, i32) {
    %c0_i32 = arith.constant 0 : i32
    %c0_i32_0 = arith.constant 0 : i32
    %c0_i32_1 = arith.constant 0 : i32
    return %c0_i32, %c0_i32_0 : i32, i32
  }
}

</mosaic_0001>

<bundles_post_ra>
// kernel: tpu_custom_call.1
= control target key start
LH: loop header
LB: loop body
LE: loop exit
PB: predicated region body
PF: predicated region fallthrough
CT: control target
= control target key end

     0   :  { %13 = vsyncpa [#allocation5], 0  ;;  %s769_s0 = inlined_call_operand.<no memory space> [shape: f32[1], index: 0, kind: input, shape index: {}]   ;;  %s770_s1 = inlined_call_operand.vmem [shape: s32[8,1], index: 1, kind: input, shape index: {}]   ;;  %s771_s2 = inlined_call_operand.vmem [shape: f32[8,128], index: 2, kind: input, shape index: {}]   ;;  %s772_s3 = inlined_call_operand.hbm [shape: f32[8,128], index: 3, kind: input, shape index: {}]   ;;  %s773_s4 = inlined_call_operand.hbm [shape: f32[8,128], index: 4, kind: input, shape index: {}]   ;;  %s774_s5 = inlined_call_operand.hbm [shape: f32[8,128], index: 5, kind: input, shape index: {}]   ;;  %s775_s6 = inlined_call_operand.hbm [shape: f32[4,128,128], index: 6, kind: input, shape index: {}]   ;;  %s776_s7 = inlined_call_operand.hbm [shape: f32[1,1], index: 7, kind: output, shape index: {}]  }
   0x1   :  { %14 = vsyncpa [#allocation8], 0 }
   0x2   :  { %15 = vsyncpa [#allocation11], 0  ;;  %s39_s26 = sshll.u32 %s773_s4, 4  ;;  %s40_s26 = int_to_ptr.hbm [resolvable:$true] %s39_s26 }
   0x3   :  { %16 = vsyncpa [#allocation6], 0  ;;  %s671_s27 = smov [#allocation7]   ;;  %s28_s8 = sshll.u32 %s772_s3, 4  ;;  %s29_s8 = int_to_ptr.hbm [resolvable:$true] %s28_s8 }
   0x4   :  { %s41_s28 = sshll.u32 %s671_s27, 4  ;;  %s672_s9 = smov [#allocation4]   ;;  %s42_s28 = int_to_ptr.vmem [resolvable:$true] %s41_s28 }
   0x5   :  { %44 = dma.hbm_to_vmem [thread:$0]  %s40_s26, 128, %s42_s28, [#allocation8]  }
   0x6   :  { %s30_s10 = sshll.u32 %s672_s9, 4  ;;  %s50_s13 = sshll.u32 %s774_s5, 4  ;;  %s31_s10 = int_to_ptr.vmem [resolvable:$true] %s30_s10  ;;  %s51_s13 = int_to_ptr.hbm [resolvable:$true] %s50_s13 }
   0x7   :  { %33 = dma.hbm_to_vmem [thread:$0]  %s29_s8, 128, %s31_s10, [#allocation5]  }
   0x8   :  { %s60_s15 = sshll.u32 %s775_s6, 4  ;;  %s673_s16 = smov [#allocation9]   ;;  %s61_s15 = int_to_ptr.hbm [resolvable:$true] %s60_s15 }
   0x9   :  { %s52_s17 = sshll.u32 %s673_s16, 4  ;;  %s674_s3 = smov [#allocation10]   ;;  %s53_s17 = int_to_ptr.vmem [resolvable:$true] %s52_s17 }
   0xa   :  { %55 = dma.hbm_to_vmem [thread:$0]  %s51_s13, 128, %s53_s17, [#allocation8]  }
   0xb   :  { %s62_s18 = sshll.u32 %s674_s3, 4  ;;  %s675_s19 = smov 128   ;;  %s63_s18 = int_to_ptr.vmem [resolvable:$true] %s62_s18 }
   0xc   :  { %s676_s20 = smov 8  }
   0xd   :  { %68 = dma.hbm_to_vmem [thread:$0]  %s61_s15, 8192, %s63_s18, [#allocation11], %s675_s19, %s675_s19, %s676_s20  }
   0xe   :  { %663 = dma.done.wait [#allocation5], 128  }
   0xf   :  { %664 = vsyncadd [#allocation5], 4294967168 }
  0x10   :  { %665 = dma.done.wait [#allocation8], 256  }
  0x11   :  { %666 = vsyncadd [#allocation8], 4294967040 }
  0x12   :  { %667 = dma.done.wait [#allocation11], 8192  }
  0x13   :  { %668 = vsyncadd [#allocation11], 4294959104  ;;  %v677_v0 = vmov 0   ;;  %v114_v1 = vld [vmem:[#allocation10 + $0x70] sm:$0xff]  ;;  %v115_v2 = vld [vmem:[#allocation10 + $0x78] sm:$0xff]  ;;  %vm365_vm6 = vcmask 7168  }
  0x14   :  { %537 = vset.pattern.permute.xlu0 %v677_v0  ;;  %538 = vset.pattern.permute.xlu1 %v677_v0  ;;  %v166_v3 = vld [vmem:[#allocation10 + $0xf0] sm:$0xff]  ;;  %v123_v4 = vpack.c.bf16 %v115_v2, %v114_v1  ;;  %v167_v5 = vld [vmem:[#allocation10 + $0xf8] sm:$0xff]  ;;  %v97_v12 = vld [vmem:[%s770_s1] sm:$0xff]  ;;  %s498_s12 = sshll.u32 %s776_s7, 4  ;;  %s680_s16 = smov [#allocation12]   ;;  %s499_s12 = int_to_ptr.hbm [resolvable:$true] %s498_s12 }
  0x15   :  { %v218_v6 = vld [vmem:[#allocation10 + $0x170] sm:$0xff]  ;;  %v219_v7 = vld [vmem:[#allocation10 + $0x178] sm:$0xff]  ;;  %v175_v8 = vpack.c.bf16 %v167_v5, %v166_v3  ;;  %vm142_vm0 = vcmp.eq.s32.totalorder %v97_v12, 0  ;;  %v112_v14 = vld [vmem:[#allocation10 + $0x60] sm:$0xff]  ;;  %vm246_vm1 = vcmp.eq.s32.totalorder %v97_v12, 2  ;;  %vm194_vm2 = vcmp.eq.s32.totalorder %v97_v12, 1 }
  0x16   :  { %v227_v9 = vpack.c.bf16 %v219_v7, %v218_v6  ;;  %v270_v10 = vld [vmem:[#allocation10 + $0x1f0] sm:$0xff]  ;;  %v271_v11 = vld [vmem:[#allocation10 + $0x1f8] sm:$0xff]  ;;  %124 = vmatpush.bf16.msra.mxu0 %v123_v4  ;;  %v113_v15 = vld [vmem:[#allocation10 + $0x68] sm:$0xff]  ;;  %v143_v17 = vsel %vm142_vm0, 1, %v677_v0  ;;  %v247_v22 = vsel %vm246_vm1, 1, %v677_v0  ;;  %vm298_vm3 = vcmp.eq.s32.totalorder %v97_v12, 3 }
  0x17   :  { %v279_v13 = vpack.c.bf16 %v271_v11, %v270_v10  ;;  %v164_v16 = vld [vmem:[#allocation10 + $0xe0] sm:$0xff]  ;;  %176 = vmatpush.bf16.msra.mxu1 %v175_v8  ;;  %v122_v18 = vpack.c.bf16 %v113_v15, %v112_v14  ;;  %v165_v19 = vld [vmem:[#allocation10 + $0xe8] sm:$0xff]  ;;  %145 = vperm.xlu0 %537, %v143_v17   ;;  %v110_v27 = vld [vmem:[#allocation10 + $0x50] sm:$0xff]  ;;  %v195_v45 = vsel %vm194_vm2, 1, %v677_v0  ;;  %v299_v50 = vsel %vm298_vm3, 1, %v677_v0 }
  0x18   :  { %228 = vmatpush.bf16.msra.mxu2 %v227_v9  ;;  %v216_v20 = vld [vmem:[#allocation10 + $0x160] sm:$0xff]  ;;  %v217_v21 = vld [vmem:[#allocation10 + $0x168] sm:$0xff]  ;;  %v174_v23 = vpack.c.bf16 %v165_v19, %v164_v16  ;;  %v111_v29 = vld [vmem:[#allocation10 + $0x58] sm:$0xff]  ;;  %249 = vperm.xlu1 %538, %v247_v22  }
  0x19   :  { %280 = vmatpush.bf16.msra.mxu3 %v279_v13  ;;  %v226_v24 = vpack.c.bf16 %v217_v21, %v216_v20  ;;  %v268_v25 = vld [vmem:[#allocation10 + $0x1e0] sm:$0xff]  ;;  %v269_v26 = vld [vmem:[#allocation10 + $0x1e8] sm:$0xff]  ;;  %v162_v30 = vld [vmem:[#allocation10 + $0xd0] sm:$0xff]  ;;  %v121_v32 = vpack.c.bf16 %v111_v29, %v110_v27 }
  0x1a   :  { %v278_v28 = vpack.c.bf16 %v269_v26, %v268_v25  ;;  %v163_v31 = vld [vmem:[#allocation10 + $0xd8] sm:$0xff]  ;;  %125 = vmatpush.bf16.msra.mxu0 %v122_v18  ;;  %v214_v33 = vld [vmem:[#allocation10 + $0x150] sm:$0xff]  ;;  %v108_v39 = vld [vmem:[#allocation10 + $0x40] sm:$0xff] }
  0x1b   :  { %v215_v34 = vld [vmem:[#allocation10 + $0x158] sm:$0xff]  ;;  %v266_v35 = vld [vmem:[#allocation10 + $0x1d0] sm:$0xff]  ;;  %177 = vmatpush.bf16.msra.mxu1 %v174_v23  ;;  %v173_v36 = vpack.c.bf16 %v163_v31, %v162_v30  ;;  %v109_v40 = vld [vmem:[#allocation10 + $0x48] sm:$0xff] }
  0x1c   :  { %229 = vmatpush.bf16.msra.mxu2 %v226_v24  ;;  %v225_v37 = vpack.c.bf16 %v215_v34, %v214_v33  ;;  %v267_v38 = vld [vmem:[#allocation10 + $0x1d8] sm:$0xff]  ;;  %v160_v42 = vld [vmem:[#allocation10 + $0xc0] sm:$0xff]  ;;  %v161_v43 = vld [vmem:[#allocation10 + $0xc8] sm:$0xff]  ;;  %v120_v49 = vpack.c.bf16 %v109_v40, %v108_v39 }
  0x1d   :  { %281 = vmatpush.bf16.msra.mxu3 %v278_v28  ;;  %v277_v41 = vpack.c.bf16 %v267_v38, %v266_v35  ;;  %v212_v44 = vld [vmem:[#allocation10 + $0x140] sm:$0xff]  ;;  %v213_v46 = vld [vmem:[#allocation10 + $0x148] sm:$0xff]  ;;  %v172_v51 = vpack.c.bf16 %v161_v43, %v160_v42  ;;  %v106_v53 = vld [vmem:[#allocation10 + $0x30] sm:$0xff] }
  0x1e   :  { %v264_v47 = vld [vmem:[#allocation10 + $0x1c0] sm:$0xff]  ;;  %v265_v48 = vld [vmem:[#allocation10 + $0x1c8] sm:$0xff]  ;;  %126 = vmatpush.bf16.msra.mxu0 %v121_v32  ;;  %v224_v52 = vpack.c.bf16 %v213_v46, %v212_v44  ;;  %v107_v54 = vld [vmem:[#allocation10 + $0x38] sm:$0xff] }
  0x1f   :  { %178 = vmatpush.bf16.msra.mxu1 %v173_v36  ;;  %v158_v55 = vld [vmem:[#allocation10 + $0xb0] sm:$0xff]  ;;  %197 = vperm.xlu0 %537, %v195_v45   ;;  %v276_v56 = vpack.c.bf16 %v265_v48, %v264_v47  ;;  %v159_v57 = vld [vmem:[#allocation10 + $0xb8] sm:$0xff]  ;;  %v119_v62 = vpack.c.bf16 %v107_v54, %v106_v53  ;;  %v104_v1 = vld [vmem:[#allocation10 + $0x20] sm:$0xff] }
  0x20   :  { %230 = vmatpush.bf16.msra.mxu2 %v225_v37  ;;  %v210_v58 = vld [vmem:[#allocation10 + $0x130] sm:$0xff]  ;;  %v211_v59 = vld [vmem:[#allocation10 + $0x138] sm:$0xff]  ;;  %301 = vperm.xlu1 %538, %v299_v50   ;;  %v171_v63 = vpack.c.bf16 %v159_v57, %v158_v55  ;;  %v105_v2 = vld [vmem:[#allocation10 + $0x28] sm:$0xff] }
  0x21   :  { %282 = vmatpush.bf16.msra.mxu3 %v277_v41  ;;  %v262_v60 = vld [vmem:[#allocation10 + $0x1b0] sm:$0xff]  ;;  %v263_v61 = vld [vmem:[#allocation10 + $0x1b8] sm:$0xff]  ;;  %v223_v0 = vpack.c.bf16 %v211_v59, %v210_v58  ;;  %v156_v3 = vld [vmem:[#allocation10 + $0xa0] sm:$0xff]  ;;  %v118_v10 = vpack.c.bf16 %v105_v2, %v104_v1 }
  0x22   :  { %127 = vmatpush.bf16.msra.mxu0 %v120_v49  ;;  %v275_v4 = vpack.c.bf16 %v263_v61, %v262_v60  ;;  %v157_v5 = vld [vmem:[#allocation10 + $0xa8] sm:$0xff]  ;;  %v208_v6 = vld [vmem:[#allocation10 + $0x120] sm:$0xff]  ;;  %v102_v11 = vld [vmem:[#allocation10 + $0x10] sm:$0xff] }
  0x23   :  { %179 = vmatpush.bf16.msra.mxu1 %v172_v51  ;;  %v209_v7 = vld [vmem:[#allocation10 + $0x128] sm:$0xff]  ;;  %v260_v8 = vld [vmem:[#allocation10 + $0x1a0] sm:$0xff]  ;;  %v170_v12 = vpack.c.bf16 %v157_v5, %v156_v3  ;;  %v103_v14 = vld [vmem:[#allocation10 + $0x18] sm:$0xff] }
  0x24   :  { %231 = vmatpush.bf16.msra.mxu2 %v224_v52  ;;  %v261_v9 = vld [vmem:[#allocation10 + $0x1a8] sm:$0xff]  ;;  %v222_v13 = vpack.c.bf16 %v209_v7, %v208_v6  ;;  %v154_v15 = vld [vmem:[#allocation10 + $0x90] sm:$0xff]  ;;  %v155_v16 = vld [vmem:[#allocation10 + $0x98] sm:$0xff]  ;;  %v117_v24 = vpack.c.bf16 %v103_v14, %v102_v11 }
  0x25   :  { %283 = vmatpush.bf16.msra.mxu3 %v276_v56  ;;  %v274_v17 = vpack.c.bf16 %v261_v9, %v260_v8  ;;  %v206_v18 = vld [vmem:[#allocation10 + $0x110] sm:$0xff]  ;;  %v207_v19 = vld [vmem:[#allocation10 + $0x118] sm:$0xff]  ;;  %v742_v20 = vld [vmem:[#allocation4] sm:$0xff]  ;;  %v169_v25 = vpack.c.bf16 %v155_v16, %v154_v15 }
  0x26   :  { %128 = vmatpush.bf16.msra.mxu0 %v119_v62  ;;  %v258_v21 = vld [vmem:[#allocation10 + $0x190] sm:$0xff]  ;;  %v259_v22 = vld [vmem:[#allocation10 + $0x198] sm:$0xff]  ;;  %v349_v23 = vmul.f32 %v742_v20, %v742_v20  ;;  %v221_v26 = vpack.c.bf16 %v207_v19, %v206_v18  ;;  %v100_v27 = vld [vmem:[#allocation10] sm:$0xff] }
  0x27   :  { %180 = vmatpush.bf16.msra.mxu1 %v171_v63  ;;  %v101_v28 = vld [vmem:[#allocation10 + $0x8] sm:$0xff]  ;;  %v152_v29 = vld [vmem:[#allocation10 + $0x80] sm:$0xff]  ;;  %v273_v30 = vpack.c.bf16 %v259_v22, %v258_v21  ;;  %v94_v38 = vld [vmem:[#allocation7] sm:$0xff] }
  0x28   :  { %232 = vmatpush.bf16.msra.mxu2 %v223_v0  ;;  %v153_v31 = vld [vmem:[#allocation10 + $0x88] sm:$0xff]  ;;  %v204_v32 = vld [vmem:[#allocation10 + $0x100] sm:$0xff]  ;;  %350 = vadd.xlane.f32.xlu2 %v349_v23  ;;  %v116_v36 = vpack.c.bf16 %v101_v28, %v100_v27  ;;  %v95_v44 = vld [vmem:[#allocation9] sm:$0xff]  ;;  %v403_v46 = vmul.f32 %v94_v38, %v94_v38 }
  0x29   :  { %284 = vmatpush.bf16.msra.mxu3 %v275_v4  ;;  %v205_v33 = vld [vmem:[#allocation10 + $0x108] sm:$0xff]  ;;  %v256_v34 = vld [vmem:[#allocation10 + $0x180] sm:$0xff]  ;;  %v168_v39 = vpack.c.bf16 %v153_v31, %v152_v29  ;;  %v99_v45 = vpack.c.bf16 %v95_v44, %v95_v44  ;;  %v430_v47 = vmul.f32 %v95_v44, %v95_v44 }
  0x2a   :  { %129 = vmatpush.bf16.msra.mxu0 %v118_v10  ;;  %v257_v35 = vld [vmem:[#allocation10 + $0x188] sm:$0xff]  ;;  %v220_v40 = vpack.c.bf16 %v205_v33, %v204_v32 }
  0x2b   :  { %181 = vmatpush.bf16.msra.mxu1 %v170_v12  ;;  %v93_v37 = vld [vmem:[%s771_s2] sm:$0xff]  ;;  %v272_v41 = vpack.c.bf16 %v257_v35, %v256_v34 }
  0x2c   :  { %233 = vmatpush.bf16.msra.mxu2 %v222_v13  ;;  %v376_v42 = vmul.f32 %v93_v37, %v93_v37  ;;  %v98_v43 = vpack.c.bf16 %v94_v38, %v93_v37 }
  0x2d   :  { %285 = vmatpush.bf16.msra.mxu3 %v274_v17 }
  0x2e   :  { %130 = vmatpush.bf16.msra.mxu0 %v117_v24 }
  0x2f   :  { %182 = vmatpush.bf16.msra.mxu1 %v169_v25 }
  0x30   :  { %234 = vmatpush.bf16.msra.mxu2 %v221_v26  ;;  %377 = vadd.xlane.f32.xlu2 %v376_v42 }
  0x31   :  { %286 = vmatpush.bf16.msra.mxu3 %v273_v30 }
  0x32   :  { %131 = vmatpush.bf16.msra.mxu0 %v116_v36 }
  0x33   :  { %183 = vmatpush.bf16.msra.mxu1 %v168_v39 }
  0x34   :  { %235 = vmatpush.bf16.msra.mxu2 %v220_v40 }
  0x35   :  { %287 = vmatpush.bf16.msra.mxu3 %v272_v41  ;;  %132 = vmatmul.bf16.vlgmr.msra.gmra.mxu0 %v98_v43 }
  0x36   :  { %184 = vmatmul.bf16.vlgmr.msra.gmra.mxu1 %v98_v43 }
  0x37   :  { %236 = vmatmul.bf16.vlgmr.msra.gmra.mxu2 %v98_v43 }
  0x38   :  { %288 = vmatmul.bf16.vlgmr.msra.gmra.mxu3 %v98_v43 }
  0x45   :  { %137 = vmatmul.bf16.gmra.mxu0 %v99_v45 }
  0x46   :  { %189 = vmatmul.bf16.gmra.mxu1 %v99_v45 }
  0x47   :  { %241 = vmatmul.bf16.gmra.mxu2 %v99_v45 }
  0x48   :  { %293 = vmatmul.bf16.gmra.mxu3 %v99_v45 }
  0x49   :  { %404 = vadd.xlane.f32.xlu0 %v403_v46 }
  0x4a   :  { %431 = vadd.xlane.f32.xlu1 %v430_v47 }
  0x89   :  { %v146_v53 = vpop.permute.xlu0 %145 }
  0x8a   :  { %v250_v6 = vpop.permute.xlu1 %249  ;;  %vm147_vm9 = vcmp.eq.s32.totalorder %v146_v53, 1 }
  0x8b   :  { %vm251_vm11 = vcmp.eq.s32.totalorder %v250_v6, 1  ;;  %v333_v6 = vlaneseq }
  0x91   :  { %v198_v3 = vpop.permute.xlu0 %197 }
  0x92   :  { %vm199_vm10 = vcmp.eq.s32.totalorder %v198_v3, 1  ;;  %v302_v21 = vpop.permute.xlu1 %301 }
  0x93   :  { %vm303_vm12 = vcmp.eq.s32.totalorder %v302_v21, 1 }
  0x9b   :  { %v351_v48 = vpop.xlane.xlu2 %350 }
  0x9c   :  { %539 = vrsqrt.f32 %v351_v48  ;;  %vm359_vm4 = vcmp.eq.f32.partialorder %v351_v48, inf  ;;  %v362_v59 = vand.u32 2147483648, %v351_v48  ;;  %vm361_vm5 = vcmp.eq.f32.partialorder %v351_v48, 0.0 }
  0xa2   :  { %v540_v49 = vpop.eup %539 }
  0xa3   :  { %v378_v50 = vpop.xlane.xlu2 %377  ;;  %v353_v51 = vmul.f32 %v540_v49, %v351_v48 }
  0xa4   :  { %541 = vrsqrt.f32 %v378_v50  ;;  %vm386_vm7 = vcmp.eq.f32.partialorder %v378_v50, inf  ;;  %v389_v8 = vand.u32 2147483648, %v378_v50  ;;  %vm388_vm8 = vcmp.eq.f32.partialorder %v378_v50, 0.0 }
  0xa5   :  { %v354_v52 = vmul.f32 %v540_v49, %v353_v51 }
  0xa7   :  { %v355_v54 = vmul.f32 0.5, %v354_v52 }
  0xa9   :  { %v356_v55 = vsub.f32 1.5, %v355_v54 }
  0xaa   :  { %v542_v56 = vpop.eup %541 }
  0xab   :  { %v357_v57 = vmul.f32 %v540_v49, %v356_v55  ;;  %v380_v58 = vmul.f32 %v542_v56, %v378_v50 }
  0xad   :  { %v358_v60 = vmul.f32 %v357_v57, %v351_v48  ;;  %v381_v61 = vmul.f32 %v542_v56, %v380_v58 }
  0xaf   :  { %v360_v0 = vsel %vm359_vm4, %v351_v48, %v358_v60  ;;  %v382_v1 = vmul.f32 0.5, %v381_v61 }
  0xb0   :  { %v363_v2 = vsel %vm361_vm5, %v362_v59, %v360_v0 }
  0xb1   :  { %v366_v4 = vsel %vm365_vm6, %v363_v2, 0.0  ;;  %v383_v5 = vsub.f32 1.5, %v382_v1 }
  0xb2   :  { %v133_v62 = vpop.f32.mrf.mxu0  ;;  %367 = vadd.xlane.f32.xlu2 %v366_v4 }
  0xb3   :  { %v185_v63 = vpop.f32.mrf.mxu1  ;;  %v384_v7 = vmul.f32 %v542_v56, %v383_v5  ;;  %v148_v18 = vsel %vm147_vm9, %v133_v62, 0.0 }
  0xb4   :  { %v200_v22 = vsel %vm199_vm10, %v185_v63, %v148_v18 }
  0xb5   :  { %v385_v10 = vmul.f32 %v384_v7, %v378_v50 }
  0xb7   :  { %v387_v14 = vsel %vm386_vm7, %v378_v50, %v385_v10 }
  0xb8   :  { %v390_v15 = vsel %vm388_vm8, %v389_v8, %v387_v14 }
  0xb9   :  { %v392_v17 = vsel %vm365_vm6, %v390_v15, 0.0 }
  0xba   :  { %v237_v9 = vpop.f32.mrf.mxu2  ;;  %v135_v12 = vpop.f32.mrf.mxu0  ;;  %393 = vadd.xlane.f32.xlu2 %v392_v17 }
  0xbb   :  { %v289_v11 = vpop.f32.mrf.mxu3  ;;  %v187_v13 = vpop.f32.mrf.mxu1  ;;  %v149_v19 = vsel %vm147_vm9, %v135_v12, 0.0  ;;  %v252_v24 = vsel %vm251_vm11, %v237_v9, %v200_v22  ;;  %v334_v12 = vand.u32 127, %v333_v6 }
  0xbc   :  { %v405_v16 = vpop.xlane.xlu0 %404  ;;  %v201_v27 = vsel %vm199_vm10, %v187_v13, %v149_v19  ;;  %v304_v31 = vsel %vm303_vm12, %v289_v11, %v252_v24 }
  0xbd   :  { %543 = vrsqrt.f32 %v405_v16  ;;  %v307_v36 = vadd.f32 %v304_v31, %v742_v20  ;;  %v432_v48 = vpop.xlane.xlu1 %431  ;;  %vm413_vm13 = vcmp.eq.f32.partialorder %v405_v16, inf  ;;  %v416_v52 = vand.u32 2147483648, %v405_v16 }
  0xbe   :  { %vm415_vm14 = vcmp.eq.f32.partialorder %v405_v16, 0.0  ;;  %545 = vrsqrt.f32 %v432_v48  ;;  %vm336_vm0 = vcmp.lt.s32.totalorder %v334_v12, 32  ;;  %vm440_vm1 = vcmp.eq.f32.partialorder %v432_v48, inf }
  0xbf   :  { %v443_v21 = vand.u32 2147483648, %v432_v48  ;;  %vm442_vm2 = vcmp.eq.f32.partialorder %v432_v48, 0.0  ;;  %v678_v31 = vmov 256.0  }
  0xc2   :  { %v239_v23 = vpop.f32.mrf.mxu2  ;;  %v138_v26 = vpop.f32.mrf.mxu0 }
  0xc3   :  { %v291_v25 = vpop.f32.mrf.mxu3  ;;  %v190_v28 = vpop.f32.mrf.mxu1  ;;  %v253_v30 = vsel %vm251_vm11, %v239_v23, %v201_v27  ;;  %v150_v33 = vsel %vm147_vm9, %v138_v26, 0.0 }
  0xc4   :  { %v544_v29 = vpop.eup %543  ;;  %v305_v34 = vsel %vm303_vm12, %v291_v25, %v253_v30  ;;  %v202_v37 = vsel %vm199_vm10, %v190_v28, %v150_v33 }
  0xc5   :  { %v407_v32 = vmul.f32 %v544_v29, %v405_v16  ;;  %v308_v40 = vsub.f32 %v307_v36, %v305_v34  ;;  %v546_v61 = vpop.eup %545 }
  0xc6   :  { %v434_v63 = vmul.f32 %v546_v61, %v432_v48 }
  0xc7   :  { %v408_v35 = vmul.f32 %v544_v29, %v407_v32  ;;  %v309_v50 = vmul.f32 %v308_v40, %v308_v40  ;;  %v679_v32 = vmov 8.0  }
  0xc8   :  { %v435_v0 = vmul.f32 %v546_v61, %v434_v63 }
  0xc9   :  { %v409_v39 = vmul.f32 0.5, %v408_v35 }
  0xca   :  { %v242_v38 = vpop.f32.mrf.mxu2  ;;  %v140_v43 = vpop.f32.mrf.mxu0  ;;  %v436_v4 = vmul.f32 0.5, %v435_v0 }
  0xcb   :  { %v254_v41 = vsel %vm251_vm11, %v242_v38, %v202_v37  ;;  %v294_v42 = vpop.f32.mrf.mxu3  ;;  %v192_v45 = vpop.f32.mrf.mxu1  ;;  %v410_v46 = vsub.f32 1.5, %v409_v39 }
  0xcc   :  { %v306_v44 = vsel %vm303_vm12, %v294_v42, %v254_v41  ;;  %v437_v8 = vsub.f32 1.5, %v436_v4 }
  0xcd   :  { %v310_v47 = vsub.f32 %v307_v36, %v306_v44  ;;  %v411_v49 = vmul.f32 %v544_v29, %v410_v46 }
  0xce   :  { %v438_v14 = vmul.f32 %v546_v61, %v437_v8 }
  0xcf   :  { %v311_v51 = vmul.f32 %v310_v47, %v310_v47  ;;  %v412_v20 = vmul.f32 %v411_v49, %v405_v16 }
  0xd0   :  { %v439_v18 = vmul.f32 %v438_v14, %v432_v48 }
  0xd1   :  { %v312_v53 = vsub.f32 %v311_v51, %v309_v50  ;;  %v414_v55 = vsel %vm413_vm13, %v405_v16, %v412_v20 }
  0xd2   :  { %v244_v54 = vpop.f32.mrf.mxu2  ;;  %v417_v58 = vsel %vm415_vm14, %v416_v52, %v414_v55  ;;  %v441_v22 = vsel %vm440_vm1, %v432_v48, %v439_v18 }
  0xd3   :  { %v314_v56 = vand.u32 2147483647, %v312_v53  ;;  %v296_v57 = vpop.f32.mrf.mxu3  ;;  %v419_v59 = vsel %vm365_vm6, %v417_v58, 0.0  ;;  %v313_v13 = vmin.f32 %v312_v53, 0.0  ;;  %v444_v23 = vsel %vm442_vm2, %v443_v21, %v441_v22 }
  0xd4   :  { %420 = vadd.xlane.f32.xlu2 %v419_v59  ;;  %v446_v24 = vsel %vm365_vm6, %v444_v23, 0.0 }
  0xd5   :  { %v315_v60 = vsub.f32 0.0, %v314_v56 }
  0xd7   :  { %v316_v62 = vmul.f32 1.442695, %v315_v60 }
  0xd9   :  { %547 = vpow2.f32 %v316_v62 }
  0xdf   :  { %v548_v1 = vpop.eup %547 }
  0xe0   :  { %v318_v2 = vadd.f32 1.0, %v548_v1  ;;  %v321_v3 = vmul.f32 -0.5, %v548_v1  ;;  %v324_v7 = vand.u32 2147483647, %v548_v1 }
  0xe2   :  { %549 = vlog2.f32 %v318_v2  ;;  %v322_v5 = vadd.f32 1.0, %v321_v3  ;;  %vm325_vm15 = vcmp.lt.f32.partialorder %v324_v7, 0.0004427343 }
  0xe3   :  { %551 = vrcp.f32 %v678_v31 }
  0xe4   :  { %v323_v11 = vmul.f32 %v548_v1, %v322_v5  ;;  %553 = vrcp.f32 %v679_v32 }
  0xe8   :  { %v550_v9 = vpop.eup %549 }
  0xe9   :  { %v320_v10 = vmul.f32 0.6931472, %v550_v9  ;;  %v552_v36 = vpop.eup %551 }
  0xea   :  { %v554_v39 = vpop.eup %553  ;;  %v470_v44 = vmul.f32 256.0, %v552_v36  ;;  %vm474_vm3 = vweird.f32 %v552_v36 }
  0xeb   :  { %v326_v15 = vsel %vm325_vm15, %v323_v11, %v320_v10  ;;  %v480_v46 = vmul.f32 8.0, %v554_v39  ;;  %vm484_vm4 = vweird.f32 %v554_v39 }
  0xec   :  { %v327_v16 = vsub.f32 %v313_v13, %v326_v15  ;;  %v471_v51 = vsub.f32 1.0, %v470_v44 }
  0xed   :  { %v481_v53 = vsub.f32 1.0, %v480_v46 }
  0xee   :  { %v338_v17 = vsub.f32 0.0, %v327_v16  ;;  %v472_v60 = vmul.f32 %v552_v36, %v471_v51 }
  0xef   :  { %v482_v62 = vmul.f32 %v554_v39, %v481_v53 }
  0xf0   :  { %v339_v19 = vsel %vm336_vm0, %v338_v17, 0.0  ;;  %v473_v3 = vadd.f32 %v552_v36, %v472_v60 }
  0xf1   :  { %340 = vadd.xlane.f32.xlu2 %v339_v19  ;;  %v483_v4 = vadd.f32 %v554_v39, %v482_v62 }
  0xf2   :  { %v475_v7 = vsel %vm474_vm3, %v552_v36, %v473_v3 }
  0xf3   :  { %v485_v8 = vsel %vm484_vm4, %v554_v39, %v483_v4 }
  0xf9   :  { %447 = vadd.xlane.f32.xlu2 %v446_v24 }
 0x125   :  { %v368_v25 = vpop.xlane.xlu2 %367 }
 0x126   :  { %v369_v28 = vrot.slane %v368_v25, 4 }
 0x128   :  { %v370_v33 = vadd.f32 %v369_v28, %v368_v25 }
 0x12a   :  { %v371_v37 = vrot.slane %v370_v33, 2 }
 0x12c   :  { %v372_v45 = vadd.f32 %v371_v37, %v370_v33 }
 0x12d   :  { %v394_v26 = vpop.xlane.xlu2 %393 }
 0x12e   :  { %v395_v29 = vrot.slane %v394_v26, 4  ;;  %v373_v20 = vrot.slane %v372_v45, 1 }
 0x130   :  { %v396_v34 = vadd.f32 %v395_v29, %v394_v26  ;;  %v374_v61 = vadd.f32 %v373_v20, %v372_v45 }
 0x132   :  { %v397_v40 = vrot.slane %v396_v34, 2 }
 0x134   :  { %v398_v48 = vadd.f32 %v397_v40, %v396_v34 }
 0x136   :  { %v399_v56 = vrot.slane %v398_v48, 1 }
 0x138   :  { %v400_v0 = vadd.f32 %v399_v56, %v398_v48 }
 0x147   :  { %v421_v27 = vpop.xlane.xlu2 %420 }
 0x148   :  { %v422_v30 = vrot.slane %v421_v27, 4 }
 0x14a   :  { %v423_v35 = vadd.f32 %v422_v30, %v421_v27 }
 0x14c   :  { %v424_v42 = vrot.slane %v423_v35, 2 }
 0x14e   :  { %v425_v49 = vadd.f32 %v424_v42, %v423_v35 }
 0x150   :  { %v426_v57 = vrot.slane %v425_v49, 1 }
 0x152   :  { %v427_v1 = vadd.f32 %v426_v57, %v425_v49 }
 0x164   :  { %v341_v38 = vpop.xlane.xlu2 %340 }
 0x165   :  { %v342_v41 = vrot.slane %v341_v38, 4 }
 0x167   :  { %v343_v43 = vadd.f32 %v342_v41, %v341_v38 }
 0x169   :  { %v344_v47 = vrot.slane %v343_v43, 2 }
 0x16b   :  { %v345_v50 = vadd.f32 %v344_v47, %v343_v43 }
 0x16c   :  { %v448_v52 = vpop.xlane.xlu2 %447 }
 0x16d   :  { %v449_v54 = vrot.slane %v448_v52, 4  ;;  %v346_v55 = vrot.slane %v345_v50, 1 }
 0x16f   :  { %v450_v58 = vadd.f32 %v449_v54, %v448_v52  ;;  %v347_v59 = vadd.f32 %v346_v55, %v345_v50 }
 0x171   :  { %v451_v63 = vrot.slane %v450_v58, 2  ;;  %513 = vpush %v347_v59 }
 0x172   :  { %515 = vpush %v374_v61 }
 0x173   :  { %v452_v2 = vadd.f32 %v451_v63, %v450_v58  ;;  %517 = vpush %v400_v0 }
 0x174   :  { %519 = vpush %v427_v1 }
 0x175   :  { %v453_v5 = vrot.slane %v452_v2, 1 }
 0x177   :  { %v454_v6 = vadd.f32 %v453_v5, %v452_v2 }
 0x179   :  { %521 = vpush %v454_v6 }
 0x17a   :  { %523 = vpush %v475_v7 }
 0x17b   :  { %525 = vpush %v485_v8 }
 0x1a2   :  { %s514_s2 = spop %513 }
 0x1a3   :  { %s516_s22 = spop %515 }
 0x1a4   :  { %s518_s23 = spop %517 }
 0x1a5   :  { %s402_s24 = sadd.f32 %s518_s23, %s516_s22  ;;  %s520_s25 = spop %519 }
 0x1a7   :  { %s429_s26 = sadd.f32 %s520_s25, %s402_s24 }
 0x1aa   :  { %s522_s27 = spop %521 }
 0x1ab   :  { %s456_s28 = sadd.f32 %s522_s27, %s429_s26  ;;  %s524_s29 = spop %523 }
 0x1ac   :  { %s526_s30 = spop %525  ;;  %s477_s9 = smul.f32 %s524_s29, %s514_s2 }
 0x1ad   :  { %s487_s8 = smul.f32 %s526_s30, %s456_s28 }
 0x1af   :  { %s489_s14 = smul.f32 %s487_s8, %s769_s0 }
 0x1b1   :  { %s490_s15 = sadd.f32 %s489_s14, %s477_s9 }
 0x1b3   :  { %492 = sst [smem:[#allocation12]] %s490_s15 }
 0x1b4   :  { %501 = dma.smem_to_hbm %s680_s16, 16, %s499_s12, [#allocation6]  }
 0x1b5   :  { %669 = dma.done.wait [#allocation6], 16  }
 0x1b6   :  { %670 = vsyncadd [#allocation6], 4294967280 }
 0x1b7   :  { %506 = sfence }
 0x1b8   :  { %507 = vsyncpa [#allocation5], 1 }
 0x1b9   :  { %508 = vsyncpa [#allocation8], 1 }
 0x1ba   :  { %509 = vsyncpa [#allocation11], 1 }
 0x1bb   :  { %510 = vsyncpa [#allocation6], 1 }

</bundles_post_ra>
